<compile_context>
chip_gen: v7x
topology: tpu7x:2x2x1
jax: 0.10.0
libtpu: 0.0.40
codegen_flags: <defaults>
</compile_context>

<pallas_src>
import numpy as np

import jax
import jax.numpy as jnp
from jax.experimental import pallas as pl
from jax.experimental.pallas import tpu as pltpu


# --------------------------------------------------------------------------
# Kernel
# --------------------------------------------------------------------------
def _td_linear_kernel(x_ref, w_ref, b_ref, o_ref):
    """One M-tile of  o = x @ w + b.  Full K resident; f32 accumulation."""
    acc = jnp.dot(x_ref[...], w_ref[...], preferred_element_type=jnp.float32)
    o_ref[...] = (acc + b_ref[...].astype(jnp.float32)).astype(o_ref.dtype)


# --------------------------------------------------------------------------
# VMEM budgeting / tile selection
# --------------------------------------------------------------------------
def _vmem_budget_bytes():
    """(tile budget, vmem_limit_bytes) derived from the chip's physical VMEM."""
    try:
        phys = int(pltpu.get_tpu_info().vmem_capacity_bytes)
    except Exception:
        phys = 64 << 20  # conservative fallback (v7x per-TC size)
    # Raise the default scoped limit but keep headroom below physical
    # (v7x: 48 MiB of 64; v5e/v6e: 96 MiB of 128).
    vmem_limit = min((phys * 3) // 4, 96 << 20)
    budget = max(vmem_limit - (4 << 20), 8 << 20)  # margin for compiler scratch
    return budget, vmem_limit


def _select_tile_m(M, K, F, x_bytes, w_bytes, out_bytes, budget, tm_cap=2048):
    """Largest M-tile (multiple of 8) that keeps double-buffered DMA in budget."""
    if M <= 8:
        return M  # full-dim block is always legal
    # Conservative: assume weights/bias are double-buffered too.
    fixed = 2 * K * F * w_bytes + 2 * F * w_bytes
    per_row = 2 * K * x_bytes + 2 * F * out_bytes
    tm_budget = max((budget - fixed) // per_row, 8)
    # Force >= 2 grid steps so both v7x TensorCores get work (negligible cost
    # on single-TC chips: one extra ~0.35 us grid step).
    tm_split = ((pl.cdiv(M, 2) + 7) // 8) * 8
    tm = min(tm_cap, tm_budget, tm_split)
    # TODO(synk): if K*F ever grows so large that even tm=8 overflows the
    # budget, add a K-tiled accumulator variant (grid axis over K).
    return max(8, (tm // 8) * 8)


# --------------------------------------------------------------------------
# Pallas wrapper: (M, K) @ (K, F) + (1, F) -> (M, F) f32
# --------------------------------------------------------------------------
def pallas_time_distributed_linear(x, w, b):
    M, K = x.shape
    K2, F = w.shape
    assert K2 == K and b.shape == (1, F)

    budget, vmem_limit = _vmem_budget_bytes()
    tm = _select_tile_m(M, K, F, x.dtype.itemsize, w.dtype.itemsize, 4, budget)
    grid = (pl.cdiv(M, tm),)

    cost = pl.CostEstimate(
        flops=2 * M * K * F,
        transcendentals=0,
        bytes_accessed=(M * K * x.dtype.itemsize
                        + K * F * w.dtype.itemsize
                        + F * b.dtype.itemsize
                        + M * F * 4),
    )

    return pl.pallas_call(
        _td_linear_kernel,
        out_shape=jax.ShapeDtypeStruct((M, F), jnp.float32),
        grid_spec=pltpu.PrefetchScalarGridSpec(
            num_scalar_prefetch=0,
            grid=grid,
            in_specs=[
                pl.BlockSpec((tm, K), lambda i: (i, 0)),  # activations tile
                pl.BlockSpec((K, F), lambda i: (0, 0)),   # weights (resident)
                pl.BlockSpec((1, F), lambda i: (0, 0)),   # bias (resident)
            ],
            out_specs=pl.BlockSpec((tm, F), lambda i: (i, 0)),
        ),
        compiler_params=pltpu.CompilerParams(
            dimension_semantics=("parallel",),
            vmem_limit_bytes=int(vmem_limit),
        ),
        cost_estimate=cost,
    )(x, w, b)


# --------------------------------------------------------------------------
# One-time parameter preparation (call OUTSIDE jit, once per weight update)
# --------------------------------------------------------------------------
def prepare_time_distributed_linear_params(w, b, C, H, W,
                                           compute_dtype=jnp.float32):
    """Fold the module's transpose(2,3)/transpose(2,4) into the weight rows.

    w: (W*C*H, F) Linear weight in the module's flatten order (W, C, H).
    b: (1, F) bias.
    Returns (w_prepped, b_prepped) where w_prepped rows are in the native
    (C, H, W) flatten order of X, so X.reshape(B*T, -1) @ w_prepped matches
    the module's transpose->flatten->linear exactly.  With
    compute_dtype=bfloat16 the weight is cast once for the bf16 fast path
    (bias stays f32: it is added to the f32 accumulator).
    """
    K, F = w.shape
    assert K == W * C * H and b.shape == (1, F)
    # module_idx(c,h,w) = w*C*H + c*H + h   (flatten order after transposes)
    # native_idx(c,h,w) = c*H*W + h*W + w   (native contiguous flatten of X)
    # perm[native_idx] = module_idx  =>  X_native_flat @ w[perm] == reference.
    module_idx = np.arange(K, dtype=np.int32).reshape(W, C, H)
    perm = np.transpose(module_idx, (1, 2, 0)).reshape(-1)
    w_prepped = jnp.asarray(w)[perm]
    if compute_dtype == jnp.bfloat16:
        w_prepped = w_prepped.astype(jnp.bfloat16)
    b_prepped = jnp.asarray(b).astype(jnp.float32)
    return w_prepped, b_prepped


# --------------------------------------------------------------------------
# Forward (jit this): exact TimeDistributed.forward semantics
# --------------------------------------------------------------------------
def time_distributed_forward(X, w_prepped, b_prepped):
    """X: (B, T, C, H, W).  Returns (B, T, F) float32.

    No activation transpose / HBM copy: X is flattened in its native
    (C, H, W) order and the weight rows were permuted once in
    prepare_time_distributed_linear_params.
    """
    B, T = X.shape[0], X.shape[1]
    K, F = w_prepped.shape
    X_flat = X.reshape(B * T, -1)
    assert X_flat.shape[1] == K

    if w_prepped.dtype == jnp.bfloat16 and X_flat.dtype == jnp.bfloat16:
        # bf16 fast path: keep X in bf16 (halves the dominant HBM read),
        # MXU runs native bf16 with f32 accumulation.
        pass
    elif X_flat.dtype != jnp.float32:
        # Module's `.float()` (no-op when X is already f32).
        X_flat = X_flat.astype(jnp.float32)

    out = pallas_time_distributed_linear(X_flat, w_prepped, b_prepped)
    return out.reshape(B, T, F)


# --------------------------------------------------------------------------
if __name__ == "__main__":
    B, T, C, H, W = 2, 8, 4, 16, 16
    F = 32
    K = W * C * H  # 1024

    key = jax.random.PRNGKey(0)
    kx, kw, kb = jax.random.split(key, 3)
    X = jax.random.normal(kx, (B, T, C, H, W), dtype=jnp.float32)
    w = jax.random.normal(kw, (K, F), dtype=jnp.float32) * 0.02
    b = jax.random.normal(kb, (1, F), dtype=jnp.float32) * 0.1

    # Reference: module's exact math path (transpose -> transpose -> flatten -> linear).
    Xr = jnp.swapaxes(jnp.swapaxes(X, 2, 3), 2, 4).reshape(B * T, -1)
    ref = (Xr.astype(jnp.float32) @ w + b).reshape(B, T, F)

    fwd = jax.jit(time_distributed_forward)

    # Exact f32 path.
    w_f32, b_f32 = prepare_time_distributed_linear_params(w, b, C, H, W)
    out = jax.block_until_ready(fwd(X, w_f32, b_f32))
    assert out.shape == (B, T, F)
    assert jnp.allclose(out, ref, atol=1e-4, rtol=1e-4)

    # bf16 fast path (opt-in approximation: X stays bf16, weights cast once).
    w_bf16, b_bf16 = prepare_time_distributed_linear_params(
        w, b, C, H, W, compute_dtype=jnp.bfloat16)
    out_bf16 = jax.block_until_ready(fwd(X.astype(jnp.bfloat16), w_bf16, b_bf16))
    assert out_bf16.shape == (B, T, F)
    assert jnp.allclose(out_bf16, ref, atol=5e-2, rtol=5e-2)

    print("KERNEL_OK")
</pallas_src>

<mosaic_0001>
module attributes {stable_mosaic.version = 11 : i64} {
  func.func @_td_linear_kernel(%arg0: i32, %arg1: memref<8x1024xf32, #tpu.memory_space<vmem>>, %arg2: memref<1024x32xf32, #tpu.memory_space<vmem>>, %arg3: memref<1x32xf32, #tpu.memory_space<vmem>>, %arg4: memref<8x32xf32, #tpu.memory_space<vmem>>) attributes {dimension_semantics = [#tpu.dimension_semantics<parallel>], iteration_bounds = array<i64: 2>, scalar_prefetch = 0 : i64, scratch_operands = 0 : i64, tpu.core_type = #tpu.core_type<tc>, window_params = [{transform_indices = @transform_0, window_bounds = array<i64: 8, 1024>}, {pipeline_mode = #tpu.pipeline_mode<synchronous>, transform_indices = @transform_1, window_bounds = array<i64: 1024, 32>}, {pipeline_mode = #tpu.pipeline_mode<synchronous>, transform_indices = @transform_2, window_bounds = array<i64: 1, 32>}, {transform_indices = @transform_3, window_bounds = array<i64: 8, 32>}]} {
    %c0 = arith.constant 0 : index
    %c0_0 = arith.constant 0 : index
    %0 = vector.load %arg1[%c0, %c0_0] : memref<8x1024xf32, #tpu.memory_space<vmem>>, vector<8x1024xf32>
    %c0_1 = arith.constant 0 : index
    %c0_2 = arith.constant 0 : index
    %1 = vector.load %arg2[%c0_1, %c0_2] : memref<1024x32xf32, #tpu.memory_space<vmem>>, vector<1024x32xf32>
    %cst = arith.constant dense<0.000000e+00> : vector<8x32xf32>
    %2 = tpu.matmul %0, %1, %cst {dimension_numbers = #tpu.dot_dimension_numbers<[1], [0], [0], [1], [0, 0, 1, 1], [], []>} : vector<8x1024xf32>, vector<1024x32xf32>, vector<8x32xf32> -> vector<8x32xf32>
    %c0_3 = arith.constant 0 : index
    %c0_4 = arith.constant 0 : index
    %3 = vector.load %arg3[%c0_3, %c0_4] : memref<1x32xf32, #tpu.memory_space<vmem>>, vector<1x32xf32>
    %4 = vector.broadcast %3 : vector<1x32xf32> to vector<8x32xf32>
    %5 = arith.addf %2, %4 : vector<8x32xf32>
    %c0_5 = arith.constant 0 : index
    %c0_6 = arith.constant 0 : index
    %6 = vector.load %arg4[%c0_5, %c0_6] : memref<8x32xf32, #tpu.memory_space<vmem>>, vector<8x32xf32>
    tpu.vector_store %arg4[%c0_5, %c0_6], %5 {strides = array<i32>} : memref<8x32xf32, #tpu.memory_space<vmem>>, vector<8x32xf32>,
    return
  }
  func.func @transform_0(%arg0: i32) -> (i32, i32) {
    %c0_i32 = arith.constant 0 : i32
    %c0_i32_0 = arith.constant 0 : i32
    return %arg0, %c0_i32 : i32, i32
  }
  func.func @transform_1(%arg0: i32) -> (i32, i32) {
    %c0_i32 = arith.constant 0 : i32
    %c0_i32_0 = arith.constant 0 : i32
    %c0_i32_1 = arith.constant 0 : i32
    return %c0_i32, %c0_i32_0 : i32, i32
  }
  func.func @transform_2(%arg0: i32) -> (i32, i32) {
    %c0_i32 = arith.constant 0 : i32
    %c0_i32_0 = arith.constant 0 : i32
    %c0_i32_1 = arith.constant 0 : i32
    return %c0_i32, %c0_i32_0 : i32, i32
  }
  func.func @transform_3(%arg0: i32) -> (i32, i32) {
    %c0_i32 = arith.constant 0 : i32
    %c0_i32_0 = arith.constant 0 : i32
    return %arg0, %c0_i32 : i32, i32
  }
}

</mosaic_0001>

<bundles_post_ra>
// kernel: time_distributed_forward.1
= control target key start
LH: loop header
LB: loop body
LE: loop exit
PB: predicated region body
PF: predicated region fallthrough
CT: control target
= control target key end

     0   :  { %8 = vsyncpa [#allocation3], 0  ;;  %s1574_s0 = inlined_call_operand.vmem [shape: f32[16,1024], index: 0, kind: input, shape index: {}]   ;;  %s1575_s1 = inlined_call_operand.vmem [shape: f32[1024,32], index: 1, kind: input, shape index: {}]   ;;  %s1576_s2 = inlined_call_operand.vmem [shape: f32[1,32], index: 2, kind: input, shape index: {}]   ;;  %s1577_s3 = inlined_call_operand.hbm [shape: f32[16,32], index: 3, kind: output, shape index: {}]  }
   0x1   :  { %10 = vsyncpa [#allocation3 + $0x1], 0  ;;  %s1072_s12 = smov 0   ;;  %s1074_s13 = smov 0  }
   0x2   :  { %s1076_s14 = smov 0   ;;  %s1078_s15 = smov 0  }
   0x3 LB: > { %s1093_s16 = sadd.s32 4294967295, %s1049_s15   ;;  %s667_s17 = sadd.s32 4294967294, %s1049_s15   ;;  %s1049_s15 = sphi %s1078_s15, %s1583_s15   ;;  %s1045_s14 = sphi %s1076_s14, %s1582_s14   ;;  %s1041_s13 = sphi %s1074_s13, %s1581_s13   ;;  %s1037_s12 = sphi %s1072_s12, %s1580_s12  }
   0x4   : > { %s1097_s18 = sadd.s32 1, %s1049_s15   ;;  %s91_s19 = sadd.s32 1, %s1045_s14 }
   0x5   : > { %s88_s20 = ssub.s32 %s1049_s15, %s1097_s18  ;;  %p101_p0 = scmp.ne.s32.totalorder %s1045_s14, %s1041_s13 }
   0x6   : > { %p89_p1 = scmp.eq.s32.totalorder %s88_s20, 0  ;;  %p102_p2 = scmp.eq.s32.totalorder %s1093_s16, 1 }
   0x7   : > { %p107_p3 = scmp.ne.s32.totalorder %s1041_s13, %s1037_s12  ;;  %p108_p4 = scmp.eq.s32.totalorder %s667_s17, 1 }
   0x8   : > { %s1108_s21 = scalar_select %p89_p1, %s1045_s14, %s91_s19  }
   0x9   : > { %p1110_p5 = por %p102_p2, %p101_p0  ;;  %p1114_p6 = por %p108_p4, %p107_p3 }
   0xa   : > { %p670_p7 = scmp.ge.s32.totalorder %s1049_s15, 1  ;;  %p140_p8 = scmp.lt.s32.totalorder %s1049_s15, 3 }
   0xc   : > { %p141_p9 = pnand %p670_p7, %p140_p8 }
   0xd   : > { %v193_v0 = vld [vmem:[%s1575_s1 + $0x80] sm:$0xff] (!%p141_p9)  ;;  %v194_v1 = vld [vmem:[%s1575_s1 + $0x88] sm:$0xff] (!%p141_p9)  ;;  %v195_v11 = vld [vmem:[%s1575_s1 + $0x90] sm:$0xff] (!%p141_p9)  ;;  %p164_p10 = scmp.lt.s32.totalorder (!%p141_p9), %s1093_s16, 1  ;;  %s161_s28 = sand.u32 (!%p141_p9), 1, %s1041_s13   ;;  %vm592_vm0 = vcmask (!%p141_p9), 261120  }
   0xe   : > { %144 = sbr.rel (%p141_p9) target bundleno = 313 (0x139), region = 32  ;;  %v177_v2 = vld [vmem:[%s1575_s1] sm:$0xff] (!%p141_p9)  ;;  %v820_v3 = vpack.c.bf16 (!%p141_p9), %v194_v1, %v193_v0  ;;  %v178_v4 = vld [vmem:[%s1575_s1 + $0x8] sm:$0xff] (!%p141_p9)  ;;  %v196_v13 = vld [vmem:[%s1575_s1 + $0x98] sm:$0xff] (!%p141_p9)  ;;  %s671_s29 = sshll.u32 (!%p141_p9), %s161_s28, 3 }
   0xf   : > { %v225_v5 = vld [vmem:[%s1575_s1 + $0x180] sm:$0xff] (!%p141_p9)  ;;  %v226_v6 = vld [vmem:[%s1575_s1 + $0x188] sm:$0xff] (!%p141_p9)  ;;  %v822_v7 = vpack.c.bf16 (!%p141_p9), %v178_v4, %v177_v2  ;;  %v179_v14 = vld [vmem:[%s1575_s1 + $0x10] sm:$0xff] (!%p141_p9)  ;;  %v824_v16 = vpack.c.bf16 (!%p141_p9), %v196_v13, %v195_v11  ;;  %s163_s30 = scalar_lea.vmem (!%p141_p9), [#allocation2], %s671_s29  ;;  %s595_s6 = scalar_lea.sflag (!%p141_p9), [#allocation3], %s161_s28 }
  0x10   : > { %v852_v8 = vpack.c.bf16 (!%p141_p9), %v226_v6, %v225_v5  ;;  %v209_v9 = vld [vmem:[%s1575_s1 + $0x100] sm:$0xff] (!%p141_p9)  ;;  %v210_v10 = vld [vmem:[%s1575_s1 + $0x108] sm:$0xff] (!%p141_p9)  ;;  %821 = vmatprep.subr.bf16.mxu0 (!%p141_p9), %v820_v3  ;;  %v180_v15 = vld [vmem:[%s1575_s1 + $0x18] sm:$0xff] (!%p141_p9) }
  0x11   : > { %v854_v12 = vpack.c.bf16 (!%p141_p9), %v210_v10, %v209_v9  ;;  %823 = vmatpush3.bf16.msra.mxu0 (!%p141_p9), %v822_v7  ;;  %v826_v17 = vpack.c.bf16 (!%p141_p9), %v180_v15, %v179_v14  ;;  %v227_v18 = vld [vmem:[%s1575_s1 + $0x190] sm:$0xff] (!%p141_p9)  ;;  %v228_v19 = vld [vmem:[%s1575_s1 + $0x198] sm:$0xff] (!%p141_p9)  ;;  %v197_v23 = vld [vmem:[%s1575_s1 + $0xa0] sm:$0xff] (!%p141_p9) }
  0x12   : > { %853 = vmatprep.subr.bf16.mxu1 (!%p141_p9), %v852_v8  ;;  %v211_v20 = vld [vmem:[%s1575_s1 + $0x110] sm:$0xff] (!%p141_p9)  ;;  %v856_v21 = vpack.c.bf16 (!%p141_p9), %v228_v19, %v227_v18  ;;  %v212_v22 = vld [vmem:[%s1575_s1 + $0x118] sm:$0xff] (!%p141_p9)  ;;  %v198_v24 = vld [vmem:[%s1575_s1 + $0xa8] sm:$0xff] (!%p141_p9)  ;;  %825 = vmatprep.subr.bf16.mxu0 (!%p141_p9), %v824_v16 }
  0x13   : > { %855 = vmatpush3.bf16.msra.mxu1 (!%p141_p9), %v854_v12  ;;  %v858_v25 = vpack.c.bf16 (!%p141_p9), %v212_v22, %v211_v20  ;;  %v828_v26 = vpack.c.bf16 (!%p141_p9), %v198_v24, %v197_v23  ;;  %v181_v27 = vld [vmem:[%s1575_s1 + $0x20] sm:$0xff] (!%p141_p9)  ;;  %v182_v28 = vld [vmem:[%s1575_s1 + $0x28] sm:$0xff] (!%p141_p9)  ;;  %v199_v35 = vld [vmem:[%s1575_s1 + $0xb0] sm:$0xff] (!%p141_p9) }
  0x14   : > { %v229_v29 = vld [vmem:[%s1575_s1 + $0x1a0] sm:$0xff] (!%p141_p9)  ;;  %857 = vmatprep.subr.bf16.mxu1 (!%p141_p9), %v856_v21  ;;  %v230_v30 = vld [vmem:[%s1575_s1 + $0x1a8] sm:$0xff] (!%p141_p9)  ;;  %v830_v33 = vpack.c.bf16 (!%p141_p9), %v182_v28, %v181_v27  ;;  %v200_v36 = vld [vmem:[%s1575_s1 + $0xb8] sm:$0xff] (!%p141_p9) }
  0x15   : > { %v213_v31 = vld [vmem:[%s1575_s1 + $0x120] sm:$0xff]  ;;  %v214_v32 = vld [vmem:[%s1575_s1 + $0x128] sm:$0xff]  ;;  %827 = vmatpush3.bf16.msra.mxu0 %v826_v17  ;;  %v860_v34 = vpack.c.bf16 %v230_v30, %v229_v29  ;;  %v183_v37 = vld [vmem:[%s1575_s1 + $0x30] sm:$0xff]  ;;  %v832_v39 = vpack.c.bf16 %v200_v36, %v199_v35  ;;  %s1226_s11 = scalar_select %p164_p10, %s1093_s16, 1 }
  0x16   : > { %829 = vmatprep.subr.bf16.mxu0 %v828_v26  ;;  %v862_v38 = vpack.c.bf16 %v214_v32, %v213_v31  ;;  %v184_v40 = vld [vmem:[%s1575_s1 + $0x38] sm:$0xff]  ;;  %v231_v41 = vld [vmem:[%s1575_s1 + $0x1b0] sm:$0xff]  ;;  %v201_v46 = vld [vmem:[%s1575_s1 + $0xc0] sm:$0xff] }
  0x17   : > { %859 = vmatpush3.bf16.msra.mxu1 %v858_v25  ;;  %v232_v42 = vld [vmem:[%s1575_s1 + $0x1b8] sm:$0xff]  ;;  %v215_v44 = vld [vmem:[%s1575_s1 + $0x130] sm:$0xff]  ;;  %v202_v47 = vld [vmem:[%s1575_s1 + $0xc8] sm:$0xff]  ;;  %v834_v48 = vpack.c.bf16 %v184_v40, %v183_v37  ;;  %s679_s24 = sshll.u32 %s1226_s11, 6 }
  0x18   : > { %861 = vmatprep.subr.bf16.mxu1 %v860_v34  ;;  %v864_v43 = vpack.c.bf16 %v232_v42, %v231_v41  ;;  %v216_v45 = vld [vmem:[%s1575_s1 + $0x138] sm:$0xff]  ;;  %v233_v49 = vld [vmem:[%s1575_s1 + $0x1c0] sm:$0xff]  ;;  %v234_v50 = vld [vmem:[%s1575_s1 + $0x1c8] sm:$0xff]  ;;  %v836_v52 = vpack.c.bf16 %v202_v47, %v201_v46  ;;  %s1280_s17 = scalar_lea.vmem %s1574_s0, %s679_s24  ;;  %s608_s24 = sshll.u32 %s163_s30, 4  ;;  %s1534_s24 = int_to_ptr.vmem [resolvable:$true] %s608_s24 }
  0x19   : > { %831 = vmatpush3.bf16.msra.mxu0 %v830_v33  ;;  %v866_v51 = vpack.c.bf16 %v216_v45, %v215_v44  ;;  %v185_v53 = vld [vmem:[%s1575_s1 + $0x40] sm:$0xff]  ;;  %v186_v54 = vld [vmem:[%s1575_s1 + $0x48] sm:$0xff]  ;;  %v868_v56 = vpack.c.bf16 %v234_v50, %v233_v49  ;;  %v203_v58 = vld [vmem:[%s1575_s1 + $0xd0] sm:$0xff]  ;;  %s987_s7 = scalar_lea.vmem %s1534_s24, 128 }
  0x1a   : > { %833 = vmatprep.subr.bf16.mxu0 %v832_v39  ;;  %v217_v55 = vld [vmem:[%s1575_s1 + $0x140] sm:$0xff]  ;;  %v218_v57 = vld [vmem:[%s1575_s1 + $0x148] sm:$0xff]  ;;  %v204_v59 = vld [vmem:[%s1575_s1 + $0xd8] sm:$0xff]  ;;  %v838_v62 = vpack.c.bf16 %v186_v54, %v185_v53  ;;  %p988_p11 = scmp.ne.s32.totalorder %s1534_s24, %s987_s7 }
  0x1b   : > { %863 = vmatpush3.bf16.msra.mxu1 %v862_v38  ;;  %v235_v60 = vld [vmem:[%s1575_s1 + $0x1d0] sm:$0xff]  ;;  %v236_v61 = vld [vmem:[%s1575_s1 + $0x1d8] sm:$0xff]  ;;  %v870_v63 = vpack.c.bf16 %v218_v57, %v217_v55  ;;  %v840_v0 = vpack.c.bf16 %v204_v59, %v203_v58  ;;  %v205_v6 = vld [vmem:[%s1575_s1 + $0xe0] sm:$0xff] }
  0x1c   : > { %865 = vmatprep.subr.bf16.mxu1 %v864_v43  ;;  %v187_v1 = vld [vmem:[%s1575_s1 + $0x50] sm:$0xff]  ;;  %v188_v2 = vld [vmem:[%s1575_s1 + $0x58] sm:$0xff]  ;;  %v872_v4 = vpack.c.bf16 %v236_v61, %v235_v60  ;;  %v206_v7 = vld [vmem:[%s1575_s1 + $0xe8] sm:$0xff]  ;;  %p989_p12 = pnand %p988_p11, %p1110_p5 }
  0x1d   : > { %835 = vmatpush3.bf16.msra.mxu0 %v834_v48  ;;  %v219_v3 = vld [vmem:[%s1575_s1 + $0x150] sm:$0xff]  ;;  %v220_v5 = vld [vmem:[%s1575_s1 + $0x158] sm:$0xff]  ;;  %v237_v8 = vld [vmem:[%s1575_s1 + $0x1e0] sm:$0xff]  ;;  %v842_v10 = vpack.c.bf16 %v188_v2, %v187_v1  ;;  %v844_v14 = vpack.c.bf16 %v206_v7, %v205_v6 }
  0x1e   : > { %837 = vmatprep.subr.bf16.mxu0 %v836_v52  ;;  %v238_v9 = vld [vmem:[%s1575_s1 + $0x1e8] sm:$0xff]  ;;  %v189_v11 = vld [vmem:[%s1575_s1 + $0x60] sm:$0xff]  ;;  %v874_v13 = vpack.c.bf16 %v220_v5, %v219_v3  ;;  %v207_v19 = vld [vmem:[%s1575_s1 + $0xf0] sm:$0xff]  ;;  %p990_p13 = pneg %p989_p12 }
  0x1f   : > { %867 = vmatpush3.bf16.msra.mxu1 %v866_v51  ;;  %v190_v12 = vld [vmem:[%s1575_s1 + $0x68] sm:$0xff]  ;;  %v221_v15 = vld [vmem:[%s1575_s1 + $0x160] sm:$0xff]  ;;  %v876_v18 = vpack.c.bf16 %v238_v9, %v237_v8  ;;  %v208_v20 = vld [vmem:[%s1575_s1 + $0xf8] sm:$0xff] }
  0x20   : > { %869 = vmatprep.subr.bf16.mxu1 %v868_v56  ;;  %v222_v16 = vld [vmem:[%s1575_s1 + $0x168] sm:$0xff]  ;;  %v172_v21 = vld [vmem:[%s1280_s17 + $0x18] sm:$0xff]  ;;  %v239_v22 = vld [vmem:[%s1575_s1 + $0x1f0] sm:$0xff]  ;;  %v846_v24 = vpack.c.bf16 %v190_v12, %v189_v11  ;;  %v848_v26 = vpack.c.bf16 %v208_v20, %v207_v19 }
  0x21   : > { %839 = vmatpush3.bf16.msra.mxu0 %v838_v62  ;;  %v170_v17 = vld [vmem:[%s1280_s17 + $0x8] sm:$0xff]  ;;  %v240_v23 = vld [vmem:[%s1575_s1 + $0x1f8] sm:$0xff]  ;;  %446 = vmatprep.mubr.f32.mxu1 %v172_v21  ;;  %v878_v25 = vpack.c.bf16 %v222_v16, %v221_v15  ;;  %v191_v27 = vld [vmem:[%s1575_s1 + $0x70] sm:$0xff] }
  0x22   : > { %841 = vmatprep.subr.bf16.mxu0 %v840_v0  ;;  %376 = vmatprep.mubr.f32.mxu0 %v170_v17  ;;  %v192_v28 = vld [vmem:[%s1575_s1 + $0x78] sm:$0xff]  ;;  %v223_v29 = vld [vmem:[%s1575_s1 + $0x170] sm:$0xff]  ;;  %v880_v30 = vpack.c.bf16 %v240_v23, %v239_v22  ;;  %v257_v32 = vld [vmem:[%s1575_s1 + $0x280] sm:$0xff] }
  0x23   : > { %871 = vmatpush3.bf16.msra.mxu1 %v870_v63  ;;  %v224_v31 = vld [vmem:[%s1575_s1 + $0x178] sm:$0xff]  ;;  %v258_v33 = vld [vmem:[%s1575_s1 + $0x288] sm:$0xff]  ;;  %v289_v34 = vld [vmem:[%s1575_s1 + $0x380] sm:$0xff]  ;;  %v850_v36 = vpack.c.bf16 %v192_v28, %v191_v27 }
  0x24   : > { %873 = vmatprep.subr.bf16.mxu1 %v872_v4  ;;  %v290_v35 = vld [vmem:[%s1575_s1 + $0x388] sm:$0xff]  ;;  %v882_v37 = vpack.c.bf16 %v224_v31, %v223_v29  ;;  %v884_v38 = vpack.c.bf16 %v258_v33, %v257_v32  ;;  %v241_v39 = vld [vmem:[%s1575_s1 + $0x200] sm:$0xff]  ;;  %v259_v44 = vld [vmem:[%s1575_s1 + $0x290] sm:$0xff] }
  0x25   : > { %843 = vmatpush3.bf16.msra.mxu0 %v842_v10  ;;  %v242_v40 = vld [vmem:[%s1575_s1 + $0x208] sm:$0xff]  ;;  %v273_v41 = vld [vmem:[%s1575_s1 + $0x300] sm:$0xff]  ;;  %v916_v42 = vpack.c.bf16 %v290_v35, %v289_v34  ;;  %v260_v45 = vld [vmem:[%s1575_s1 + $0x298] sm:$0xff] }
  0x26   : > { %845 = vmatprep.subr.bf16.mxu0 %v844_v14  ;;  %v274_v43 = vld [vmem:[%s1575_s1 + $0x308] sm:$0xff]  ;;  %v291_v46 = vld [vmem:[%s1575_s1 + $0x390] sm:$0xff]  ;;  %v292_v47 = vld [vmem:[%s1575_s1 + $0x398] sm:$0xff]  ;;  %v886_v49 = vpack.c.bf16 %v242_v40, %v241_v39  ;;  %v888_v52 = vpack.c.bf16 %v260_v45, %v259_v44 }
  0x27   : > { %875 = vmatpush3.bf16.msra.mxu1 %v874_v13  ;;  %v169_v48 = vld [vmem:[%s1280_s17] sm:$0xff]  ;;  %v171_v50 = vld [vmem:[%s1280_s17 + $0x10] sm:$0xff]  ;;  %v918_v51 = vpack.c.bf16 %v274_v43, %v273_v41  ;;  %v244_v54 = vld [vmem:[%s1575_s1 + $0x218] sm:$0xff]  ;;  %v920_v56 = vpack.c.bf16 %v292_v47, %v291_v46 }
  0x28   : > { %877 = vmatprep.subr.bf16.mxu1 %v876_v18  ;;  %v243_v53 = vld [vmem:[%s1575_s1 + $0x210] sm:$0xff]  ;;  %v276_v57 = vld [vmem:[%s1575_s1 + $0x318] sm:$0xff]  ;;  %v261_v58 = vld [vmem:[%s1575_s1 + $0x2a0] sm:$0xff] }
  0x29   : > { %847 = vmatpush3.bf16.msra.mxu0 %v846_v24  ;;  %v275_v55 = vld [vmem:[%s1575_s1 + $0x310] sm:$0xff]  ;;  %v262_v59 = vld [vmem:[%s1575_s1 + $0x2a8] sm:$0xff]  ;;  %v293_v60 = vld [vmem:[%s1575_s1 + $0x3a0] sm:$0xff]  ;;  %v890_v62 = vpack.c.bf16 %v244_v54, %v243_v53 }
  0x2a   : > { %849 = vmatprep.subr.bf16.mxu0 %v848_v26  ;;  %v294_v61 = vld [vmem:[%s1575_s1 + $0x3a8] sm:$0xff]  ;;  %v922_v63 = vpack.c.bf16 %v276_v57, %v275_v55  ;;  %v892_v0 = vpack.c.bf16 %v262_v59, %v261_v58  ;;  %v245_v1 = vld [vmem:[%s1575_s1 + $0x220] sm:$0xff]  ;;  %v263_v6 = vld [vmem:[%s1575_s1 + $0x2b0] sm:$0xff] }
  0x2b   : > { %879 = vmatpush3.bf16.msra.mxu1 %v878_v25  ;;  %v246_v2 = vld [vmem:[%s1575_s1 + $0x228] sm:$0xff]  ;;  %v277_v3 = vld [vmem:[%s1575_s1 + $0x320] sm:$0xff]  ;;  %v924_v4 = vpack.c.bf16 %v294_v61, %v293_v60  ;;  %v264_v7 = vld [vmem:[%s1575_s1 + $0x2b8] sm:$0xff] }
  0x2c   : > { %881 = vmatprep.subr.bf16.mxu1 %v880_v30  ;;  %v278_v5 = vld [vmem:[%s1575_s1 + $0x328] sm:$0xff]  ;;  %v295_v8 = vld [vmem:[%s1575_s1 + $0x3b0] sm:$0xff]  ;;  %v296_v9 = vld [vmem:[%s1575_s1 + $0x3b8] sm:$0xff]  ;;  %v894_v10 = vpack.c.bf16 %v246_v2, %v245_v1  ;;  %v896_v12 = vpack.c.bf16 %v264_v7, %v263_v6 }
  0x2d   : > { %851 = vmatpush3.bf16.msra.mxu0 %v850_v36  ;;  %v926_v11 = vpack.c.bf16 %v278_v5, %v277_v3  ;;  %v247_v13 = vld [vmem:[%s1575_s1 + $0x230] sm:$0xff]  ;;  %v248_v14 = vld [vmem:[%s1575_s1 + $0x238] sm:$0xff]  ;;  %v928_v16 = vpack.c.bf16 %v296_v9, %v295_v8  ;;  %v265_v18 = vld [vmem:[%s1575_s1 + $0x2c0] sm:$0xff] }
  0x2e   : > { %885 = vmatprep.subr.bf16.mxu0 %v884_v38  ;;  %v279_v15 = vld [vmem:[%s1575_s1 + $0x330] sm:$0xff]  ;;  %v280_v17 = vld [vmem:[%s1575_s1 + $0x338] sm:$0xff]  ;;  %v266_v19 = vld [vmem:[%s1575_s1 + $0x2c8] sm:$0xff]  ;;  %v898_v22 = vpack.c.bf16 %v248_v14, %v247_v13 }
  0x2f   : > { %883 = vmatpush3.bf16.msra.mxu1 %v882_v37  ;;  %v297_v20 = vld [vmem:[%s1575_s1 + $0x3c0] sm:$0xff]  ;;  %v298_v21 = vld [vmem:[%s1575_s1 + $0x3c8] sm:$0xff]  ;;  %v176_v24 = vld [vmem:[%s1280_s17 + $0x38] sm:$0xff]  ;;  %v930_v25 = vpack.c.bf16 %v280_v17, %v279_v15  ;;  %v900_v26 = vpack.c.bf16 %v266_v19, %v265_v18 }
  0x30   : > { %917 = vmatprep.subr.bf16.mxu1 %v916_v42  ;;  %377 = vmatmul.mubr.f32.vlgmr.msra.gmra.mrb[0].mxu0 %v169_v48  ;;  %v174_v23 = vld [vmem:[%s1280_s17 + $0x28] sm:$0xff]  ;;  %v249_v27 = vld [vmem:[%s1575_s1 + $0x240] sm:$0xff]  ;;  %v932_v30 = vpack.c.bf16 %v298_v21, %v297_v20  ;;  %v267_v32 = vld [vmem:[%s1575_s1 + $0x2d0] sm:$0xff] }
  0x31   : > { %887 = vmatpush3.bf16.msra.mxu0 %v886_v49  ;;  %v250_v28 = vld [vmem:[%s1575_s1 + $0x248] sm:$0xff]  ;;  %v281_v29 = vld [vmem:[%s1575_s1 + $0x340] sm:$0xff]  ;;  %v268_v33 = vld [vmem:[%s1575_s1 + $0x2d8] sm:$0xff]  ;;  %516 = vmatprep.mubr.f32.mxu0 %v174_v23 }
  0x32   : > { %447 = vmatmul.mubr.f32.vlgmr.msra.gmra.mrb[0].mxu1 %v171_v50  ;;  %889 = vmatprep.subr.bf16.mxu0 %v888_v52  ;;  %v282_v31 = vld [vmem:[%s1575_s1 + $0x348] sm:$0xff]  ;;  %v299_v34 = vld [vmem:[%s1575_s1 + $0x3d0] sm:$0xff]  ;;  %v300_v35 = vld [vmem:[%s1575_s1 + $0x3d8] sm:$0xff]  ;;  %v902_v36 = vpack.c.bf16 %v250_v28, %v249_v27  ;;  %v904_v38 = vpack.c.bf16 %v268_v33, %v267_v32 }
  0x33   : > { %919 = vmatpush3.bf16.msra.mxu1 %v918_v51  ;;  %586 = vmatprep.mubr.f32.mxu1 %v176_v24  ;;  %v934_v37 = vpack.c.bf16 %v282_v31, %v281_v29  ;;  %v251_v39 = vld [vmem:[%s1575_s1 + $0x250] sm:$0xff]  ;;  %v252_v40 = vld [vmem:[%s1575_s1 + $0x258] sm:$0xff]  ;;  %v936_v42 = vpack.c.bf16 %v300_v35, %v299_v34  ;;  %v269_v44 = vld [vmem:[%s1575_s1 + $0x2e0] sm:$0xff] }
  0x34   : > { %921 = vmatprep.subr.bf16.mxu1 %v920_v56  ;;  %v283_v41 = vld [vmem:[%s1575_s1 + $0x350] sm:$0xff]  ;;  %v284_v43 = vld [vmem:[%s1575_s1 + $0x358] sm:$0xff]  ;;  %v270_v45 = vld [vmem:[%s1575_s1 + $0x2e8] sm:$0xff]  ;;  %v906_v48 = vpack.c.bf16 %v252_v40, %v251_v39 }
  0x35   : > { %891 = vmatpush3.bf16.msra.mxu0 %v890_v62  ;;  %v301_v46 = vld [vmem:[%s1575_s1 + $0x3e0] sm:$0xff]  ;;  %v302_v47 = vld [vmem:[%s1575_s1 + $0x3e8] sm:$0xff]  ;;  %v938_v49 = vpack.c.bf16 %v284_v43, %v283_v41  ;;  %v908_v50 = vpack.c.bf16 %v270_v45, %v269_v44  ;;  %v271_v56 = vld [vmem:[%s1575_s1 + $0x2f0] sm:$0xff] }
  0x36   : > { %893 = vmatprep.subr.bf16.mxu0 %v892_v0  ;;  %v253_v51 = vld [vmem:[%s1575_s1 + $0x260] sm:$0xff]  ;;  %v254_v52 = vld [vmem:[%s1575_s1 + $0x268] sm:$0xff]  ;;  %v940_v54 = vpack.c.bf16 %v302_v47, %v301_v46  ;;  %v272_v57 = vld [vmem:[%s1575_s1 + $0x2f8] sm:$0xff] }
  0x37   : > { %923 = vmatpush3.bf16.msra.mxu1 %v922_v63  ;;  %v285_v53 = vld [vmem:[%s1575_s1 + $0x360] sm:$0xff]  ;;  %v286_v55 = vld [vmem:[%s1575_s1 + $0x368] sm:$0xff]  ;;  %v303_v58 = vld [vmem:[%s1575_s1 + $0x3f0] sm:$0xff]  ;;  %v910_v60 = vpack.c.bf16 %v254_v52, %v253_v51  ;;  %v912_v62 = vpack.c.bf16 %v272_v57, %v271_v56 }
  0x38   : > { %925 = vmatprep.subr.bf16.mxu1 %v924_v4  ;;  %v304_v59 = vld [vmem:[%s1575_s1 + $0x3f8] sm:$0xff]  ;;  %v942_v61 = vpack.c.bf16 %v286_v55, %v285_v53  ;;  %v255_v63 = vld [vmem:[%s1575_s1 + $0x270] sm:$0xff]  ;;  %v173_v6 = vld [vmem:[%s1280_s17 + $0x20] sm:$0xff] }
  0x39   : > { %895 = vmatpush3.bf16.msra.mxu0 %v894_v10  ;;  %v256_v0 = vld [vmem:[%s1575_s1 + $0x278] sm:$0xff]  ;;  %v944_v1 = vpack.c.bf16 %v304_v59, %v303_v58  ;;  %v287_v2 = vld [vmem:[%s1575_s1 + $0x370] sm:$0xff]  ;;  %v674_v9 = vld [vmem:[%s1576_s2] ss:$0 sm:$0xff] }
  0x3a   : > { %897 = vmatprep.subr.bf16.mxu0 %v896_v12  ;;  %v288_v3 = vld [vmem:[%s1575_s1 + $0x378] sm:$0xff]  ;;  %v914_v4 = vpack.c.bf16 %v256_v0, %v255_v63  ;;  %v175_v7 = vld [vmem:[%s1280_s17 + $0x30] sm:$0xff]  ;;  %s676_s17 = sshll.u32 %s1093_s16, 7  ;;  %s1051_s16 = smov [#allocation2]  }
  0x3b   : > { %927 = vmatpush3.bf16.msra.mxu1 %v926_v11  ;;  %v946_v5 = vpack.c.bf16 %v288_v3, %v287_v2  ;;  %s1532_s5 = scalar_lea.hbm %s1577_s3, %s676_s17  ;;  %s991_s8 = sshll.u32 %s1051_s16, 4  ;;  %s992_s8 = int_to_ptr.vmem [resolvable:$false] %s991_s8 }
  0x3c   : > { %929 = vmatprep.subr.bf16.mxu1 %v928_v16  ;;  %s993_s9 = scalar_lea.vmem %s992_s8, 256  ;;  %p994_p0 = scmp.lt.s32.totalorder %s1534_s24, %s992_s8 }
  0x3d   : > { %899 = vmatpush3.bf16.msra.mxu0 %v898_v22  ;;  %p995_p1 = scmp.lt.s32.totalorder %s993_s9, %s987_s7 }
  0x3e   : > { %901 = vmatprep.subr.bf16.mxu0 %v900_v26 }
  0x3f   : > { %931 = vmatpush3.bf16.msra.mxu1 %v930_v25  ;;  %p996_p2 = por %p995_p1, %p994_p0 }
  0x40   : > { %933 = vmatprep.subr.bf16.mxu1 %v932_v30 }
  0x41   : > { %903 = vmatpush3.bf16.msra.mxu0 %v902_v36  ;;  %p997_p3 = pnand %p996_p2, %p990_p13 }
  0x42   : > { %905 = vmatprep.subr.bf16.mxu0 %v904_v38 }
  0x43   : > { %935 = vmatpush3.bf16.msra.mxu1 %v934_v37 }
  0x44   : > { %937 = vmatprep.subr.bf16.mxu1 %v936_v42 }
  0x45   : > { %907 = vmatpush3.bf16.msra.mxu0 %v906_v48 }
  0x46   : > { %909 = vmatprep.subr.bf16.mxu0 %v908_v50 }
  0x47   : > { %939 = vmatpush3.bf16.msra.mxu1 %v938_v49 }
  0x48   : > { %941 = vmatprep.subr.bf16.mxu1 %v940_v54 }
  0x49   : > { %911 = vmatpush3.bf16.msra.mxu0 %v910_v60 }
  0x4a   : > { %913 = vmatprep.subr.bf16.mxu0 %v912_v62 }
  0x4b   : > { %943 = vmatpush3.bf16.msra.mxu1 %v942_v61 }
  0x4c   : > { %945 = vmatprep.subr.bf16.mxu1 %v944_v1 }
  0x4d   : > { %915 = vmatpush3.bf16.msra.mxu0 %v914_v4 }
  0x4f   : > { %947 = vmatpush3.bf16.msra.mxu1 %v946_v5 }
  0x50   : > { %517 = vmatmul.mubr.f32.vlgmr.msra.gmra.mrb[2].mxu0 %v173_v6 }
  0x52   : > { %587 = vmatmul.mubr.f32.vlgmr.msra.gmra.mrb[2].mxu1 %v175_v7 }
 0x103   : > { %v712_v8 = vpop.f32.mrb[0].mxu0 }
 0x104   : > { %v713_v10 = vpop.f32.mrb[1].mxu0 }
 0x105   : > { %v747_v11 = vpop.f32.mrb[0].mxu1  ;;  %v714_v12 = vadd.f32 %v713_v10, %v712_v8 }
 0x106   : > { %v748_v13 = vpop.f32.mrb[1].mxu1 }
 0x107   : > { %v749_v14 = vadd.f32 %v748_v13, %v747_v11  ;;  %v379_v15 = vadd.f32 %v714_v12, %v674_v9 }
 0x109   : > { %v449_v16 = vadd.f32 %v749_v14, %v379_v15 }
 0x123   : > { %v782_v17 = vpop.f32.mrb[2].mxu0 }
 0x124   : > { %v783_v18 = vpop.f32.mrb[3].mxu0 }
 0x125   : > { %v817_v19 = vpop.f32.mrb[2].mxu1  ;;  %v784_v20 = vadd.f32 %v783_v18, %v782_v17 }
 0x126   : > { %v818_v21 = vpop.f32.mrb[3].mxu1 }
 0x127   : > { %v819_v22 = vadd.f32 %v818_v21, %v817_v19  ;;  %v519_v23 = vadd.f32 %v784_v20, %v449_v16 }
 0x129   : > { %v589_v24 = vadd.f32 %v819_v22, %v519_v23 }
 0x12b   : > { %593 = vst.msk [vmem:[%s163_s30] sm:$0xff] %vm592_vm0, %v589_v24 }
 0x12c   : > { %1000 = shalt.err (!%p997_p3)
}
 0x12d   : > { %s1001_s10 = scalar_lea.hbm %s1532_s5, 128  ;;  %s1005_s25 = scalar_lea.hbm %s1577_s3, 256 }
 0x12e   : > { %p1002_p4 = scmp.ne.s32.totalorder %s1532_s5, %s1001_s10  ;;  %p1006_p9 = scmp.lt.u32.totalorder %s1532_s5, %s1577_s3 }
 0x12f   : > { %p1007_p10 = scmp.lt.u32.totalorder %s1005_s25, %s1001_s10  ;;  %p1009_p12 = scmp.lt.u32.totalorder %s1001_s10, %s1532_s5 }
 0x130   : > { %p1003_p7 = pnand %p1002_p4, %p1110_p5 }
 0x131   : > { %p1008_p11 = por %p1007_p10, %p1006_p9 }
 0x132   : > { %p1004_p8 = pneg %p1003_p7 }
 0x133   : > { %p1010_p13 = por %p1009_p12, %p1008_p11 }
 0x135   : > { %p1011_p0 = pnand %p1010_p13, %p1004_p8 }
 0x137   : > { %1014 = shalt.err (!%p1011_p0)
}
 0x138   : > { %948 = dma.vmem_to_hbm [thread:$0]  (%p1110_p5), %s1534_s24, 128, %s1532_s5, %s595_s6  }
 0x139 PF: > { %p954_p1 = scmp.ge.s32.totalorder %s1049_s15, 2  ;;  %s620_s28 = sand.u32 1, %s1037_s12  }
 0x13a   : > { %s621_s29 = scalar_lea.sflag [#allocation3], %s620_s28 }
 0x13b   : > { %p951_p2 = pnand %p954_p1, %p1114_p6 }
 0x13d   : > { %1032 = dma.done.wait (!%p951_p2), %s621_s29, 128  }
 0x13e   : > { %1034 = vsyncadd (!%p951_p2), %s621_s29, 4294967168  ;;  %p13_p3 = scmp.ge.s32.totalorder %s1097_s18, 4   ;;  %s1580_s12 = smov %s1041_s13 }
 0x13f   : > { %s1581_s13 = smov %s1045_s14  ;;  %s1582_s14 = smov %s1108_s21 }
 0x140   : > { %s1583_s15 = smov %s1097_s18  ;;  %15 = sbr.rel (!%p13_p3) target bundleno = 3 (0x3), region = 67 }
 0x147   :  { %626 = vsyncpa [#allocation3], 1 }
 0x148   :  { %628 = vsyncpa [#allocation3 + $0x1], 1 }

</bundles_post_ra>
